<compile_context>
chip_gen: v7x
topology: tpu7x:2x2x1
jax: 0.10.0
libtpu: 0.0.40
codegen_flags: <defaults>
</compile_context>

<pallas_src>
import math
import functools

import jax
import jax.numpy as jnp
from jax.experimental import pallas as pl
from jax.experimental.pallas import tpu as pltpu


# ----------------------------------------------------------------------------
# helpers
# ----------------------------------------------------------------------------

def _round_up(x, m):
    return (x + m - 1) // m * m


@functools.lru_cache(maxsize=1)
def _tpu_defaults():
    """Returns (default batch tile, min parallel tiles, usable VMEM cap bytes)."""
    block_b, min_tiles, vmem_cap = 256, 1, 48 * 1024 * 1024
    try:
        kind = jax.devices()[0].device_kind.lower()
        if "v5e" in kind or "v5 lite" in kind or "v5lite" in kind:
            block_b = 128           # 4x 128x128 MXU: M=128 already saturates it
        if "v7" in kind:
            min_tiles = 2           # 2 TensorCores per chip
    except Exception:
        pass
    try:
        phys = int(pltpu.get_tpu_info().vmem_capacity_bytes)
        # Leave headroom for Mosaic internal scratch; never ask for the whole thing.
        vmem_cap = min(max(phys - 16 * 1024 * 1024, 32 * 1024 * 1024),
                       110 * 1024 * 1024)
    except Exception:
        pass
    return int(block_b), int(min_tiles), int(vmem_cap)


def _choose_tile_b(batch, block_b, min_tiles=1):
    """Batch tile: multiple of 8, <= padded batch, >= min_tiles grid tiles if possible."""
    bp = _round_up(max(batch, 1), 8)
    tile_b = max(8, min(_round_up(block_b, 8), bp))
    bp = _round_up(bp, tile_b)
    while (min_tiles > 1 and bp // tile_b < min_tiles and tile_b > 8
           and (tile_b // 2) % 8 == 0):
        tile_b //= 2
    return tile_b, bp


def _vmem_limit(resident, pipelined, temps, cap):
    """resident (single-buffered) + double-buffered pipelined blocks + temporaries."""
    est = resident + 2 * pipelined + temps
    return int(min(max(2 * est, 32 * 1024 * 1024), cap))


# ----------------------------------------------------------------------------
# parameter packing (done once, outside the per-step call path)
# ----------------------------------------------------------------------------

def prepare_lstm_params(w_ih, w_hh, b_ih=None, b_hh=None, *,
                        matmul_dtype=jnp.float32):
    """Pack PyTorch-layout LSTMCell parameters for the Pallas kernels.

    w_ih: (4H, D), w_hh: (4H, H), b_ih/b_hh: (4H,) or None.
    Gate order [i, f, g, o] is preserved; each gate's H columns are padded to
    Hp = round_up(H, 128) so gate slices / stores are lane-tile aligned.
    """
    g4, d = w_ih.shape
    h = g4 // 4
    hp = _round_up(h, 128)

    if b_ih is None:
        b_ih = jnp.zeros((4 * h,), w_ih.dtype)
    if b_hh is None:
        b_hh = jnp.zeros((4 * h,), w_hh.dtype)

    # (4H, D) -> (D, 4, H) -> pad gate columns -> (D, 4*Hp)
    wx = jnp.transpose(w_ih.reshape(4, h, d), (2, 0, 1))
    wx = jnp.pad(wx, ((0, 0), (0, 0), (0, hp - h))).reshape(d, 4 * hp)

    # (4H, H) -> (H, 4, H) -> pad hidden rows to Hp (zeros) and gate columns to Hp
    wh = jnp.transpose(w_hh.reshape(4, h, h), (2, 0, 1))
    wh = jnp.pad(wh, ((0, hp - h), (0, 0), (0, hp - h))).reshape(hp, 4 * hp)

    bias = (b_ih + b_hh).reshape(4, h)
    bias = jnp.pad(bias, ((0, 0), (0, hp - h))).reshape(1, 4 * hp)

    # TODO(synk): for H < 128, per-gate padding to 128 lanes wastes EUP/VPU work; a
    # packed 4H->multiple-of-128 layout with pltpu.roll gate alignment would avoid it.
    return {
        "wx": wx.astype(matmul_dtype),
        "wh": wh.astype(matmul_dtype),
        "b": bias.astype(jnp.float32),
        "hidden_size": int(h),
        "hidden_pad": int(hp),
        "input_size": int(d),
    }


# ----------------------------------------------------------------------------
# single-step kernel: per-gate dots against resident wx / wh, batch-tiled grid
# ----------------------------------------------------------------------------

def _lstm_step_kernel(x_ref, hx_ref, cx_ref, wx_ref, wh_ref, b_ref, hy_ref, cy_ref):
    hp = hy_ref.shape[1]                                   # lane-aligned gate width
    mm_dtype = wx_ref.dtype
    x = x_ref[...]                                         # already mm_dtype
    h = hx_ref[...].astype(mm_dtype)                       # state kept f32 outside

    def gate(gi, act):
        col = slice(gi * hp, (gi + 1) * hp)
        z = jnp.dot(x, wx_ref[:, col], preferred_element_type=jnp.float32)
        z = z + jnp.dot(h, wh_ref[:, col], preferred_element_type=jnp.float32)
        return act(z + b_ref[:, col])

    ingate = gate(0, jax.nn.sigmoid)
    forgetgate = gate(1, jax.nn.sigmoid)
    cellgate = gate(2, jnp.tanh)
    outgate = gate(3, jax.nn.sigmoid)

    cy = forgetgate * cx_ref[...].astype(jnp.float32) + ingate * cellgate
    hy = outgate * jnp.tanh(cy)

    cy_ref[...] = cy.astype(cy_ref.dtype)
    hy_ref[...] = hy.astype(hy_ref.dtype)


@functools.partial(jax.jit, static_argnames=("hidden_size", "hidden_pad",
                                             "block_b", "min_tiles", "vmem_cap"))
def _lstm_step_call(x, hx, cx, wx, wh, b, *, hidden_size, hidden_pad,
                    block_b, min_tiles, vmem_cap):
    batch, d = x.shape
    h, hp = hidden_size, hidden_pad
    gdim = 4 * hp
    mm_dtype = wx.dtype
    out_dtype = cx.dtype

    tile_b, bp = _choose_tile_b(batch, block_b, min_tiles)

    # Layout pads only (no concat copy): batch rows + hidden lanes.
    x_p = jnp.pad(x, ((0, bp - batch), (0, 0))).astype(mm_dtype)
    hx_p = jnp.pad(hx, ((0, bp - batch), (0, hp - h)))
    cx_p = jnp.pad(cx, ((0, bp - batch), (0, hp - h)))

    mm_is = jnp.dtype(mm_dtype).itemsize
    out_is = jnp.dtype(out_dtype).itemsize
    resident = (wx.size + wh.size) * mm_is + b.size * 4            # single-buffered
    pipelined = tile_b * (d * mm_is + 4 * hp * out_is)             # x, hx, cx, hy, cy
    temps = 8 * tile_b * hp * 4                                    # f32 gate tiles
    vmem_limit = _vmem_limit(resident, pipelined, temps, vmem_cap)

    hy, cy = pl.pallas_call(
        _lstm_step_kernel,
        out_shape=(jax.ShapeDtypeStruct((bp, hp), out_dtype),
                   jax.ShapeDtypeStruct((bp, hp), out_dtype)),
        grid=(bp // tile_b,),
        in_specs=[
            pl.BlockSpec((tile_b, d), lambda i: (i, 0)),
            pl.BlockSpec((tile_b, hp), lambda i: (i, 0)),
            pl.BlockSpec((tile_b, hp), lambda i: (i, 0)),
            # Resident weights/bias: single-buffered (they never change).
            pl.BlockSpec((d, gdim), lambda i: (0, 0), pipeline_mode=pl.Buffered(1)),
            pl.BlockSpec((hp, gdim), lambda i: (0, 0), pipeline_mode=pl.Buffered(1)),
            pl.BlockSpec((1, gdim), lambda i: (0, 0), pipeline_mode=pl.Buffered(1)),
        ],
        out_specs=(
            pl.BlockSpec((tile_b, hp), lambda i: (i, 0)),
            pl.BlockSpec((tile_b, hp), lambda i: (i, 0)),
        ),
        compiler_params=pltpu.CompilerParams(
            dimension_semantics=("parallel",),
            vmem_limit_bytes=vmem_limit),
    )(x_p, hx_p, cx_p, wx, wh, b)

    return hy[:batch, :h], cy[:batch, :h]


def lstm_cell(x, hx, cx, params, *, block_b=None):
    """One LSTMCell step. params comes from prepare_lstm_params()."""
    block_b_def, min_tiles, vmem_cap = _tpu_defaults()
    if block_b is None:
        block_b = block_b_def
    return _lstm_step_call(x, hx, cx, params["wx"], params["wh"], params["b"],
                           hidden_size=params["hidden_size"],
                           hidden_pad=params["hidden_pad"],
                           block_b=block_b, min_tiles=min_tiles,
                           vmem_cap=vmem_cap)


# ----------------------------------------------------------------------------
# fused-sequence kernel: input projection hoisted out of the recurrence,
# time blocked on the grid, h/c carried in f32 VMEM scratch
# ----------------------------------------------------------------------------

def _lstm_seq_kernel(gx_ref, h0_ref, c0_ref, wh_ref, hseq_ref, cfin_ref,
                     h_sc, c_sc, *, t_total, t_tile):
    tblk = pl.program_id(1)
    hp = h_sc.shape[1]
    mm_dtype = wh_ref.dtype

    @pl.when(tblk == 0)
    def _():
        h_sc[...] = h0_ref[...].astype(jnp.float32)
        c_sc[...] = c0_ref[...].astype(jnp.float32)

    def step(tt, carry):
        h_mm = h_sc[...].astype(mm_dtype)
        c_prev = c_sc[...]

        def gate(gi, act):
            col = slice(gi * hp, (gi + 1) * hp)
            z = gx_ref[tt, :, col]                       # x-projection + bias (f32)
            z = z + jnp.dot(h_mm, wh_ref[:, col],
                            preferred_element_type=jnp.float32)
            return act(z)

        ingate = gate(0, jax.nn.sigmoid)
        forgetgate = gate(1, jax.nn.sigmoid)
        cellgate = gate(2, jnp.tanh)
        outgate = gate(3, jax.nn.sigmoid)

        cy = forgetgate * c_prev + ingate * cellgate
        hy = outgate * jnp.tanh(cy)

        h_sc[...] = hy
        c_sc[...] = cy
        hseq_ref[tt] = hy.astype(hseq_ref.dtype)

        @pl.when(tblk * t_tile + tt == t_total - 1)      # only the real last step
        def _():
            cfin_ref[...] = cy.astype(cfin_ref.dtype)

        return carry

    jax.lax.fori_loop(0, t_tile, step, 0, unroll=True)


@functools.partial(jax.jit, static_argnames=("hidden_size", "hidden_pad", "block_b",
                                             "min_tiles", "time_block", "vmem_cap"))
def _lstm_seq_call(x_seq, h0, c0, wx, wh, b, *, hidden_size, hidden_pad,
                   block_b, min_tiles, time_block, vmem_cap):
    t_len, batch, d = x_seq.shape
    h, hp = hidden_size, hidden_pad
    gdim = 4 * hp
    mm_dtype = wx.dtype
    out_dtype = h0.dtype

    tile_b, bp = _choose_tile_b(batch, block_b, min_tiles)
    t_tile = max(1, min(time_block, t_len))
    t_pad = _round_up(t_len, t_tile)

    # Hoisted input projection: one big near-peak matmul outside the serial loop.
    gx = jnp.dot(x_seq.astype(mm_dtype).reshape(t_len * batch, d), wx,
                 preferred_element_type=jnp.float32)
    gx = gx.reshape(t_len, batch, gdim) + b.reshape(1, 1, gdim)
    gx = jnp.pad(gx, ((0, t_pad - t_len), (0, bp - batch), (0, 0)))

    h0_p = jnp.pad(h0, ((0, bp - batch), (0, hp - h)))
    c0_p = jnp.pad(c0, ((0, bp - batch), (0, hp - h)))

    mm_is = jnp.dtype(mm_dtype).itemsize
    out_is = jnp.dtype(out_dtype).itemsize
    resident = (wh.size * mm_is                    # resident recurrent weight
                + 2 * tile_b * hp * 4              # h/c scratch
                + 2 * tile_b * hp * out_is)        # h0/c0 (single-buffered)
    pipelined = tile_b * (t_tile * gdim * 4        # gates_x block
                          + t_tile * hp * out_is   # hseq block
                          + hp * out_is)           # cfin block
    temps = 8 * tile_b * hp * 4
    vmem_limit = _vmem_limit(resident, pipelined, temps, vmem_cap)

    kernel = functools.partial(_lstm_seq_kernel, t_total=t_len, t_tile=t_tile)

    hy_seq, cy_fin = pl.pallas_call(
        kernel,
        out_shape=(jax.ShapeDtypeStruct((t_pad, bp, hp), out_dtype),
                   jax.ShapeDtypeStruct((bp, hp), out_dtype)),
        grid_spec=pltpu.PrefetchScalarGridSpec(
            num_scalar_prefetch=0,
            grid=(bp // tile_b, t_pad // t_tile),
            in_specs=[
                pl.BlockSpec((t_tile, tile_b, gdim), lambda bb, t: (t, bb, 0)),
                pl.BlockSpec((tile_b, hp), lambda bb, t: (bb, 0),
                             pipeline_mode=pl.Buffered(1)),
                pl.BlockSpec((tile_b, hp), lambda bb, t: (bb, 0),
                             pipeline_mode=pl.Buffered(1)),
                pl.BlockSpec((hp, gdim), lambda bb, t: (0, 0),
                             pipeline_mode=pl.Buffered(1)),
            ],
            out_specs=[
                pl.BlockSpec((t_tile, tile_b, hp), lambda bb, t: (t, bb, 0)),
                pl.BlockSpec((tile_b, hp), lambda bb, t: (bb, 0)),
            ],
            scratch_shapes=[pltpu.VMEM((tile_b, hp), jnp.float32),
                            pltpu.VMEM((tile_b, hp), jnp.float32)],
        ),
        compiler_params=pltpu.CompilerParams(
            dimension_semantics=("parallel", "arbitrary"),
            vmem_limit_bytes=vmem_limit),
    )(gx, h0_p, c0_p, wh)

    return hy_seq[:t_len, :batch, :h], cy_fin[:batch, :h]


def lstm_cell_sequence(x_seq, h0, c0, params, *, block_b=None, time_block=8):
    """Run the LSTM cell over x_seq (T, B, D) in a single pallas_call.

    Returns (hy_seq (T, B, H), cy_final (B, H)).
    """
    block_b_def, min_tiles, vmem_cap = _tpu_defaults()
    if block_b is None:
        block_b = block_b_def
    return _lstm_seq_call(x_seq, h0, c0, params["wx"], params["wh"], params["b"],
                          hidden_size=params["hidden_size"],
                          hidden_pad=params["hidden_pad"],
                          block_b=block_b, min_tiles=min_tiles,
                          time_block=time_block, vmem_cap=vmem_cap)


# ----------------------------------------------------------------------------
# pure-JAX reference (PyTorch semantics)
# ----------------------------------------------------------------------------

def _reference_lstm_cell(x, hx, cx, w_ih, w_hh, b_ih, b_hh):
    gates = x @ w_ih.T + b_ih + hx @ w_hh.T + b_hh
    i, f, g, o = jnp.split(gates, 4, axis=1)
    i = jax.nn.sigmoid(i)
    f = jax.nn.sigmoid(f)
    g = jnp.tanh(g)
    o = jax.nn.sigmoid(o)
    cy = f * cx + i * g
    hy = o * jnp.tanh(cy)
    return hy, cy


# ----------------------------------------------------------------------------
# demo / correctness check
# ----------------------------------------------------------------------------

if __name__ == "__main__":
    B = 8             # batch
    input_size = 16   # D
    hidden_size = 32  # H (padded to 128 lanes inside the kernel)
    T = 6             # sequence length for the fused-time-loop kernel

    key = jax.random.PRNGKey(0)
    k_x, k_wih, k_whh, k_bih, k_bhh, k_seq = jax.random.split(key, 6)

    # uniform(-stdv, stdv), stdv = 1/sqrt(hidden_size), like reset_parameters()
    stdv = 1.0 / math.sqrt(hidden_size)
    w_ih = jax.random.uniform(k_wih, (4 * hidden_size, input_size),
                              jnp.float32, -stdv, stdv)
    w_hh = jax.random.uniform(k_whh, (4 * hidden_size, hidden_size),
                              jnp.float32, -stdv, stdv)
    b_ih = jax.random.uniform(k_bih, (4 * hidden_size,), jnp.float32, -stdv, stdv)
    b_hh = jax.random.uniform(k_bhh, (4 * hidden_size,), jnp.float32, -stdv, stdv)

    x = jax.random.normal(k_x, (B, input_size), jnp.float32)
    hx = jnp.zeros((B, hidden_size), jnp.float32)   # forward() with hx=None path
    cx = jnp.zeros((B, hidden_size), jnp.float32)

    # ---- f32 MXU path: exact check ----
    params32 = prepare_lstm_params(w_ih, w_hh, b_ih, b_hh,
                                   matmul_dtype=jnp.float32)

    hy, cy = lstm_cell(x, hx, cx, params32)
    jax.block_until_ready((hy, cy))
    hy_ref, cy_ref = _reference_lstm_cell(x, hx, cx, w_ih, w_hh, b_ih, b_hh)
    assert jnp.allclose(hy, hy_ref, atol=1e-5, rtol=1e-5)
    assert jnp.allclose(cy, cy_ref, atol=1e-5, rtol=1e-5)

    # second step with non-trivial state (unrolled-RNN style)
    hy2, cy2 = lstm_cell(x, hy, cy, params32)
    jax.block_until_ready((hy2, cy2))
    hy2_ref, cy2_ref = _reference_lstm_cell(x, hy_ref, cy_ref,
                                            w_ih, w_hh, b_ih, b_hh)
    assert jnp.allclose(hy2, hy2_ref, atol=1e-5, rtol=1e-5)
    assert jnp.allclose(cy2, cy2_ref, atol=1e-5, rtol=1e-5)

    # ---- fused time-loop kernel over a sequence ----
    x_seq = jax.random.normal(k_seq, (T, B, input_size), jnp.float32)
    hy_seq, cy_fin = lstm_cell_sequence(x_seq, hx, cx, params32)
    jax.block_until_ready((hy_seq, cy_fin))

    h_r, c_r = hx, cx
    hy_seq_ref = []
    for t in range(T):
        h_r, c_r = _reference_lstm_cell(x_seq[t], h_r, c_r,
                                        w_ih, w_hh, b_ih, b_hh)
        hy_seq_ref.append(h_r)
    hy_seq_ref = jnp.stack(hy_seq_ref, axis=0)
    assert jnp.allclose(hy_seq, hy_seq_ref, atol=1e-5, rtol=1e-5)
    assert jnp.allclose(cy_fin, c_r, atol=1e-5, rtol=1e-5)

    # ---- bf16 MXU-input path (f32 state + f32 accumulate/pointwise): loose check ----
    params_bf16 = prepare_lstm_params(w_ih, w_hh, b_ih, b_hh,
                                      matmul_dtype=jnp.bfloat16)
    hy_b, cy_b = lstm_cell(x, hx, cx, params_bf16)
    jax.block_until_ready((hy_b, cy_b))
    assert jnp.allclose(hy_b, hy_ref, atol=2e-2, rtol=2e-2)
    assert jnp.allclose(cy_b, cy_ref, atol=2e-2, rtol=2e-2)

    print("KERNEL_OK")
</pallas_src>

<mosaic_0001>
module attributes {stable_mosaic.version = 11 : i64} {
  func.func @_lstm_step_kernel(%arg0: i32, %arg1: memref<8x16xf32, #tpu.memory_space<vmem>>, %arg2: memref<8x128xf32, #tpu.memory_space<vmem>>, %arg3: memref<8x128xf32, #tpu.memory_space<vmem>>, %arg4: memref<16x512xf32, #tpu.memory_space<vmem>>, %arg5: memref<128x512xf32, #tpu.memory_space<vmem>>, %arg6: memref<1x512xf32, #tpu.memory_space<vmem>>, %arg7: memref<8x128xf32, #tpu.memory_space<vmem>>, %arg8: memref<8x128xf32, #tpu.memory_space<vmem>>) attributes {dimension_semantics = [#tpu.dimension_semantics<parallel>], iteration_bounds = array<i64: 1>, scalar_prefetch = 0 : i64, scratch_operands = 0 : i64, tpu.core_type = #tpu.core_type<tc>, window_params = [{transform_indices = @transform_0, window_bounds = array<i64: 8, 16>}, {transform_indices = @transform_1, window_bounds = array<i64: 8, 128>}, {transform_indices = @transform_2, window_bounds = array<i64: 8, 128>}, {pipeline_mode = #tpu.pipeline_mode<synchronous>, transform_indices = @transform_3, window_bounds = array<i64: 16, 512>}, {pipeline_mode = #tpu.pipeline_mode<synchronous>, transform_indices = @transform_4, window_bounds = array<i64: 128, 512>}, {pipeline_mode = #tpu.pipeline_mode<synchronous>, transform_indices = @transform_5, window_bounds = array<i64: 1, 512>}, {transform_indices = @transform_6, window_bounds = array<i64: 8, 128>}, {transform_indices = @transform_7, window_bounds = array<i64: 8, 128>}]} {
    %c0 = arith.constant 0 : index
    %c0_0 = arith.constant 0 : index
    %0 = vector.load %arg1[%c0, %c0_0] : memref<8x16xf32, #tpu.memory_space<vmem>>, vector<8x16xf32>
    %c0_1 = arith.constant 0 : index
    %c0_2 = arith.constant 0 : index
    %1 = vector.load %arg2[%c0_1, %c0_2] : memref<8x128xf32, #tpu.memory_space<vmem>>, vector<8x128xf32>
    %c0_3 = arith.constant 0 : index
    %c0_4 = arith.constant 0 : index
    %2 = vector.load %arg4[%c0_3, %c0_4] : memref<16x512xf32, #tpu.memory_space<vmem>>, vector<16x128xf32>
    %cst = arith.constant dense<0.000000e+00> : vector<8x128xf32>
    %3 = tpu.matmul %0, %2, %cst {dimension_numbers = #tpu.dot_dimension_numbers<[1], [0], [0], [1], [0, 0, 1, 1], [], []>} : vector<8x16xf32>, vector<16x128xf32>, vector<8x128xf32> -> vector<8x128xf32>
    %c0_5 = arith.constant 0 : index
    %c0_6 = arith.constant 0 : index
    %4 = vector.load %arg5[%c0_5, %c0_6] : memref<128x512xf32, #tpu.memory_space<vmem>>, vector<128x128xf32>
    %cst_7 = arith.constant dense<0.000000e+00> : vector<8x128xf32>
    %5 = tpu.matmul %1, %4, %cst_7 {dimension_numbers = #tpu.dot_dimension_numbers<[1], [0], [0], [1], [0, 0, 1, 1], [], []>} : vector<8x128xf32>, vector<128x128xf32>, vector<8x128xf32> -> vector<8x128xf32>
    %6 = arith.addf %3, %5 : vector<8x128xf32>
    %c0_8 = arith.constant 0 : index
    %c0_9 = arith.constant 0 : index
    %7 = vector.load %arg6[%c0_8, %c0_9] : memref<1x512xf32, #tpu.memory_space<vmem>>, vector<1x128xf32>
    %8 = vector.broadcast %7 : vector<1x128xf32> to vector<8x128xf32>
    %9 = arith.addf %6, %8 : vector<8x128xf32>
    %10 = arith.negf %9 : vector<8x128xf32>
    %11 = math.exp %10 : vector<8x128xf32>
    %cst_10 = arith.constant 1.000000e+00 : f32
    %12 = vector.broadcast %cst_10 : f32 to vector<8x128xf32>
    %13 = arith.addf %12, %11 : vector<8x128xf32>
    %14 = arith.divf %12, %13 : vector<8x128xf32>
    %c0_11 = arith.constant 0 : index
    %c128 = arith.constant 128 : index
    %15 = vector.load %arg4[%c0_11, %c128] : memref<16x512xf32, #tpu.memory_space<vmem>>, vector<16x128xf32>
    %cst_12 = arith.constant dense<0.000000e+00> : vector<8x128xf32>
    %16 = tpu.matmul %0, %15, %cst_12 {dimension_numbers = #tpu.dot_dimension_numbers<[1], [0], [0], [1], [0, 0, 1, 1], [], []>} : vector<8x16xf32>, vector<16x128xf32>, vector<8x128xf32> -> vector<8x128xf32>
    %c0_13 = arith.constant 0 : index
    %c128_14 = arith.constant 128 : index
    %17 = vector.load %arg5[%c0_13, %c128_14] : memref<128x512xf32, #tpu.memory_space<vmem>>, vector<128x128xf32>
    %cst_15 = arith.constant dense<0.000000e+00> : vector<8x128xf32>
    %18 = tpu.matmul %1, %17, %cst_15 {dimension_numbers = #tpu.dot_dimension_numbers<[1], [0], [0], [1], [0, 0, 1, 1], [], []>} : vector<8x128xf32>, vector<128x128xf32>, vector<8x128xf32> -> vector<8x128xf32>
    %19 = arith.addf %16, %18 : vector<8x128xf32>
    %c0_16 = arith.constant 0 : index
    %c128_17 = arith.constant 128 : index
    %20 = vector.load %arg6[%c0_16, %c128_17] : memref<1x512xf32, #tpu.memory_space<vmem>>, vector<1x128xf32>
    %21 = vector.broadcast %20 : vector<1x128xf32> to vector<8x128xf32>
    %22 = arith.addf %19, %21 : vector<8x128xf32>
    %23 = arith.negf %22 : vector<8x128xf32>
    %24 = math.exp %23 : vector<8x128xf32>
    %cst_18 = arith.constant 1.000000e+00 : f32
    %25 = vector.broadcast %cst_18 : f32 to vector<8x128xf32>
    %26 = arith.addf %25, %24 : vector<8x128xf32>
    %27 = arith.divf %25, %26 : vector<8x128xf32>
    %c0_19 = arith.constant 0 : index
    %c256 = arith.constant 256 : index
    %28 = vector.load %arg4[%c0_19, %c256] : memref<16x512xf32, #tpu.memory_space<vmem>>, vector<16x128xf32>
    %cst_20 = arith.constant dense<0.000000e+00> : vector<8x128xf32>
    %29 = tpu.matmul %0, %28, %cst_20 {dimension_numbers = #tpu.dot_dimension_numbers<[1], [0], [0], [1], [0, 0, 1, 1], [], []>} : vector<8x16xf32>, vector<16x128xf32>, vector<8x128xf32> -> vector<8x128xf32>
    %c0_21 = arith.constant 0 : index
    %c256_22 = arith.constant 256 : index
    %30 = vector.load %arg5[%c0_21, %c256_22] : memref<128x512xf32, #tpu.memory_space<vmem>>, vector<128x128xf32>
    %cst_23 = arith.constant dense<0.000000e+00> : vector<8x128xf32>
    %31 = tpu.matmul %1, %30, %cst_23 {dimension_numbers = #tpu.dot_dimension_numbers<[1], [0], [0], [1], [0, 0, 1, 1], [], []>} : vector<8x128xf32>, vector<128x128xf32>, vector<8x128xf32> -> vector<8x128xf32>
    %32 = arith.addf %29, %31 : vector<8x128xf32>
    %c0_24 = arith.constant 0 : index
    %c256_25 = arith.constant 256 : index
    %33 = vector.load %arg6[%c0_24, %c256_25] : memref<1x512xf32, #tpu.memory_space<vmem>>, vector<1x128xf32>
    %34 = vector.broadcast %33 : vector<1x128xf32> to vector<8x128xf32>
    %35 = arith.addf %32, %34 : vector<8x128xf32>
    %36 = math.tanh %35 : vector<8x128xf32>
    %c0_26 = arith.constant 0 : index
    %c384 = arith.constant 384 : index
    %37 = vector.load %arg4[%c0_26, %c384] : memref<16x512xf32, #tpu.memory_space<vmem>>, vector<16x128xf32>
    %cst_27 = arith.constant dense<0.000000e+00> : vector<8x128xf32>
    %38 = tpu.matmul %0, %37, %cst_27 {dimension_numbers = #tpu.dot_dimension_numbers<[1], [0], [0], [1], [0, 0, 1, 1], [], []>} : vector<8x16xf32>, vector<16x128xf32>, vector<8x128xf32> -> vector<8x128xf32>
    %c0_28 = arith.constant 0 : index
    %c384_29 = arith.constant 384 : index
    %39 = vector.load %arg5[%c0_28, %c384_29] : memref<128x512xf32, #tpu.memory_space<vmem>>, vector<128x128xf32>
    %cst_30 = arith.constant dense<0.000000e+00> : vector<8x128xf32>
    %40 = tpu.matmul %1, %39, %cst_30 {dimension_numbers = #tpu.dot_dimension_numbers<[1], [0], [0], [1], [0, 0, 1, 1], [], []>} : vector<8x128xf32>, vector<128x128xf32>, vector<8x128xf32> -> vector<8x128xf32>
    %41 = arith.addf %38, %40 : vector<8x128xf32>
    %c0_31 = arith.constant 0 : index
    %c384_32 = arith.constant 384 : index
    %42 = vector.load %arg6[%c0_31, %c384_32] : memref<1x512xf32, #tpu.memory_space<vmem>>, vector<1x128xf32>
    %43 = vector.broadcast %42 : vector<1x128xf32> to vector<8x128xf32>
    %44 = arith.addf %41, %43 : vector<8x128xf32>
    %45 = arith.negf %44 : vector<8x128xf32>
    %46 = math.exp %45 : vector<8x128xf32>
    %cst_33 = arith.constant 1.000000e+00 : f32
    %47 = vector.broadcast %cst_33 : f32 to vector<8x128xf32>
    %48 = arith.addf %47, %46 : vector<8x128xf32>
    %49 = arith.divf %47, %48 : vector<8x128xf32>
    %c0_34 = arith.constant 0 : index
    %c0_35 = arith.constant 0 : index
    %50 = vector.load %arg3[%c0_34, %c0_35] : memref<8x128xf32, #tpu.memory_space<vmem>>, vector<8x128xf32>
    %51 = arith.mulf %27, %50 : vector<8x128xf32>
    %52 = arith.mulf %14, %36 : vector<8x128xf32>
    %53 = arith.addf %51, %52 : vector<8x128xf32>
    %54 = math.tanh %53 : vector<8x128xf32>
    %55 = arith.mulf %49, %54 : vector<8x128xf32>
    %c0_36 = arith.constant 0 : index
    %c0_37 = arith.constant 0 : index
    %56 = vector.load %arg8[%c0_36, %c0_37] : memref<8x128xf32, #tpu.memory_space<vmem>>, vector<8x128xf32>
    tpu.vector_store %arg8[%c0_36, %c0_37], %53 {strides = array<i32>} : memref<8x128xf32, #tpu.memory_space<vmem>>, vector<8x128xf32>,
    %c0_38 = arith.constant 0 : index
    %c0_39 = arith.constant 0 : index
    %57 = vector.load %arg7[%c0_38, %c0_39] : memref<8x128xf32, #tpu.memory_space<vmem>>, vector<8x128xf32>
    tpu.vector_store %arg7[%c0_38, %c0_39], %55 {strides = array<i32>} : memref<8x128xf32, #tpu.memory_space<vmem>>, vector<8x128xf32>,
    return
  }
  func.func @transform_0(%arg0: i32) -> (i32, i32) {
    %c0_i32 = arith.constant 0 : i32
    %c0_i32_0 = arith.constant 0 : i32
    return %arg0, %c0_i32 : i32, i32
  }
  func.func @transform_1(%arg0: i32) -> (i32, i32) {
    %c0_i32 = arith.constant 0 : i32
    %c0_i32_0 = arith.constant 0 : i32
    return %arg0, %c0_i32 : i32, i32
  }
  func.func @transform_2(%arg0: i32) -> (i32, i32) {
    %c0_i32 = arith.constant 0 : i32
    %c0_i32_0 = arith.constant 0 : i32
    return %arg0, %c0_i32 : i32, i32
  }
  func.func @transform_3(%arg0: i32) -> (i32, i32) {
    %c0_i32 = arith.constant 0 : i32
    %c0_i32_0 = arith.constant 0 : i32
    %c0_i32_1 = arith.constant 0 : i32
    return %c0_i32, %c0_i32_0 : i32, i32
  }
  func.func @transform_4(%arg0: i32) -> (i32, i32) {
    %c0_i32 = arith.constant 0 : i32
    %c0_i32_0 = arith.constant 0 : i32
    %c0_i32_1 = arith.constant 0 : i32
    return %c0_i32, %c0_i32_0 : i32, i32
  }
  func.func @transform_5(%arg0: i32) -> (i32, i32) {
    %c0_i32 = arith.constant 0 : i32
    %c0_i32_0 = arith.constant 0 : i32
    %c0_i32_1 = arith.constant 0 : i32
    return %c0_i32, %c0_i32_0 : i32, i32
  }
  func.func @transform_6(%arg0: i32) -> (i32, i32) {
    %c0_i32 = arith.constant 0 : i32
    %c0_i32_0 = arith.constant 0 : i32
    return %arg0, %c0_i32 : i32, i32
  }
  func.func @transform_7(%arg0: i32) -> (i32, i32) {
    %c0_i32 = arith.constant 0 : i32
    %c0_i32_0 = arith.constant 0 : i32
    return %arg0, %c0_i32 : i32, i32
  }
}

</mosaic_0001>

<bundles_post_ra>
// kernel: _lstm_step_call.1
= control target key start
LH: loop header
LB: loop body
LE: loop exit
PB: predicated region body
PF: predicated region fallthrough
CT: control target
= control target key end

     0   :  { %13 = vsyncpa [#allocation3], 0  ;;  %s1456_s0 = inlined_call_operand.vmem [shape: f32[8,16], index: 0, kind: input, shape index: {}]   ;;  %s1457_s1 = inlined_call_operand.vmem [shape: f32[8,128], index: 1, kind: input, shape index: {}]   ;;  %s1458_s2 = inlined_call_operand.vmem [shape: f32[8,128], index: 2, kind: input, shape index: {}]   ;;  %s1459_s3 = inlined_call_operand.hbm [shape: f32[16,512], index: 3, kind: input, shape index: {}]   ;;  %s1460_s4 = inlined_call_operand.hbm [shape: f32[128,512], index: 4, kind: input, shape index: {}]   ;;  %s1461_s5 = inlined_call_operand.vmem [shape: f32[1,512], index: 5, kind: input, shape index: {}]   ;;  %s1462_s6 = inlined_call_operand.hbm [shape: f32[8,128], index: 6, kind: output, shape index: {0}]   ;;  %s1463_s7 = inlined_call_operand.hbm [shape: f32[8,128], index: 7, kind: output, shape index: {1}]  }
   0x1   :  { %14 = vsyncpa [#allocation6], 0 }
   0x2   :  { %15 = vsyncpa [#allocation4], 0 }
   0x3   :  { %16 = vsyncpa [#allocation9], 0  ;;  %s1270_s24 = smov [#allocation2]   ;;  %s1174_s28 = scalar_lea.hbm %s1459_s3, 1024 }
   0x4   :  { %s28_s25 = sshll.u32 %s1270_s24, 4  ;;  %p1175_p0 = scmp.ne.s32.totalorder %s1459_s3, %s1174_s28  ;;  %s29_s25 = int_to_ptr.vmem [resolvable:$true] %s28_s25 }
   0x5   :  { %p1178_p1 = scmp.lt.u32.totalorder %s1174_s28, %s1459_s3 }
   0x7   :  { %p1180_p2 = pnand %p1178_p1, %p1175_p0 }
   0x9   :  { %1183 = shalt.err (!%p1180_p2)
}
   0xa   :  { %s1184_s10 = scalar_lea.vmem %s29_s25, 1024  ;;  %p1189_p4 = scmp.lt.s32.totalorder %s29_s25, %s29_s25 }
   0xb   :  { %p1185_p3 = scmp.ne.s32.totalorder %s29_s25, %s1184_s10  ;;  %p1190_p5 = scmp.lt.s32.totalorder %s1184_s10, %s1184_s10 }
   0xd   :  { %p1191_p6 = por %p1190_p5, %p1189_p4 }
   0xf   :  { %p1192_p7 = pnand %p1191_p6, %p1185_p3 }
  0x11   :  { %1195 = shalt.err (!%p1192_p7)
}
  0x12   :  { %s1271_s11 = smov 512   ;;  %s1272_s12 = smov 32  }
  0x13   :  { %34 = dma.hbm_to_vmem [thread:$0]  %s1459_s3, 1024, %s29_s25, [#allocation3], %s1271_s11, %s1271_s11, %s1272_s12  }
  0x14   :  { %s1273_s15 = smov [#allocation5]   ;;  %s1196_s19 = scalar_lea.hbm %s1460_s4, 8192 }
  0x15   :  { %s40_s16 = sshll.u32 %s1273_s15, 4  ;;  %p1197_p8 = scmp.ne.s32.totalorder %s1460_s4, %s1196_s19  ;;  %s41_s16 = int_to_ptr.vmem [resolvable:$true] %s40_s16 }
  0x16   :  { %p1200_p9 = scmp.lt.u32.totalorder %s1196_s19, %s1460_s4 }
  0x18   :  { %p1202_p10 = pnand %p1200_p9, %p1197_p8 }
  0x1a   :  { %1205 = shalt.err (!%p1202_p10)
}
  0x1b   :  { %s1206_s24 = scalar_lea.vmem %s41_s16, 8192  ;;  %p1211_p12 = scmp.lt.s32.totalorder %s41_s16, %s41_s16 }
  0x1c   :  { %p1207_p11 = scmp.ne.s32.totalorder %s41_s16, %s1206_s24  ;;  %p1212_p13 = scmp.lt.s32.totalorder %s1206_s24, %s1206_s24 }
  0x1e   :  { %p1213_p0 = por %p1212_p13, %p1211_p12 }
  0x20   :  { %p1214_p1 = pnand %p1213_p0, %p1207_p11 }
  0x22   :  { %1217 = shalt.err (!%p1214_p1)
}
  0x23   :  { %46 = dma.hbm_to_vmem [thread:$0]  %s1460_s4, 8192, %s41_s16, [#allocation6], %s1271_s11, %s1271_s11, %s1272_s12  }
  0x24   :  { %1262 = dma.done.wait [#allocation3], 1024  }
  0x25   :  { %1263 = vsyncadd [#allocation3], 4294966272 }
  0x26   :  { %1264 = dma.done.wait [#allocation6], 8192  }
  0x27   :  { %1265 = vsyncadd [#allocation6], 4294959104  ;;  %v1274_v0 = vmov 0.0|0.0   ;;  %vm1275_vm0 = vmmov 0   ;;  %v1276_v1 = vmov 0.0   ;;  %v59_v2 = vld [vmem:[#allocation5] sm:$0xff] }
  0x28   :  { %1041 = vmatprep.subr.bf16.mxu0 %v1274_v0  ;;  %1065 = vmatprep.subr.bf16.mxu1 %v1274_v0  ;;  %v60_v3 = vld [vmem:[#allocation5 + $0x20] sm:$0xff]  ;;  %v235_v10 = vld [vmem:[#allocation5 + $0x8] sm:$0xff]  ;;  %vm145_vm1 = vcmask 130048   ;;  %v407_v58 = vld [vmem:[#allocation5 + $0x10] sm:$0xff]  ;;  %s1277_s14 = smov [#allocation8]  }
  0x29   :  { %912 = vmatprep.mubr.msk.f32.mxu1 %vm1275_vm0, %v1276_v1  ;;  %905 = vmatprep.mubr.msk.f32.mxu0 %vm1275_vm0, %v1276_v1  ;;  %v57_v4 = vld [vmem:[#allocation2] sm:$0xff]  ;;  %v1042_v5 = vpack.c.bf16 %v60_v3, %v59_v2  ;;  %v236_v11 = vld [vmem:[#allocation5 + $0x28] sm:$0xff]  ;;  %v408_v59 = vld [vmem:[#allocation5 + $0x30] sm:$0xff]  ;;  %s768_s15 = sshll.u32 %s1277_s14, 4  ;;  %s769_s15 = int_to_ptr.vmem [resolvable:$true] %s768_s15 }
  0x2a   :  { %v58_v6 = vld [vmem:[#allocation2 + $0x20] sm:$0xff]  ;;  %v1069_v14 = vpack.c.bf16 %v236_v11, %v235_v10  ;;  %v237_v17 = vld [vmem:[#allocation5 + $0x48] sm:$0xff]  ;;  %v405_v60 = vld [vmem:[#allocation2 + $0x10] sm:$0xff]  ;;  %v1096_v62 = vpack.c.bf16 %v408_v59, %v407_v58  ;;  %p1223_p3 = scmp.lt.s32.totalorder %s769_s15, %s769_s15 }
  0x2b   :  { %v61_v7 = vld [vmem:[#allocation5 + $0x40] sm:$0xff]  ;;  %v1066_v9 = vpack.c.bf16 %v58_v6, %v57_v4  ;;  %1043 = vmatpush3.bf16.msra.mxu0 %v1042_v5  ;;  %v238_v18 = vld [vmem:[#allocation5 + $0x68] sm:$0xff]  ;;  %v406_v61 = vld [vmem:[#allocation2 + $0x30] sm:$0xff] }
  0x2c   :  { %v62_v8 = vld [vmem:[#allocation5 + $0x60] sm:$0xff]  ;;  %1044 = vmatprep.subr.bf16.mxu0 %v1274_v0  ;;  %v1072_v20 = vpack.c.bf16 %v238_v18, %v237_v17  ;;  %v239_v23 = vld [vmem:[#allocation5 + $0x88] sm:$0xff]  ;;  %v1120_v63 = vpack.c.bf16 %v406_v61, %v405_v60  ;;  %v409_v2 = vld [vmem:[#allocation5 + $0x50] sm:$0xff] }
  0x2d   :  { %v1045_v12 = vpack.c.bf16 %v62_v8, %v61_v7  ;;  %1067 = vmatpush3.bf16.msra.mxu1 %v1066_v9  ;;  %v1353_v13 = vld [vmem:[%s1456_s0] sm:$0xff]  ;;  %v240_v24 = vld [vmem:[#allocation5 + $0xa8] sm:$0xff]  ;;  %v410_v3 = vld [vmem:[#allocation5 + $0x70] sm:$0xff] }
  0x2e   :  { %v63_v15 = vld [vmem:[#allocation5 + $0x80] sm:$0xff]  ;;  %1068 = vmatprep.subr.bf16.mxu1 %v1274_v0  ;;  %v1075_v26 = vpack.c.bf16 %v240_v24, %v239_v23  ;;  %v241_v29 = vld [vmem:[#allocation5 + $0xc8] sm:$0xff]  ;;  %v574_v4 = vld [vmem:[#allocation5 + $0x18] sm:$0xff]  ;;  %v1099_v6 = vpack.c.bf16 %v410_v3, %v409_v2 }
  0x2f   :  { %v64_v16 = vld [vmem:[#allocation5 + $0xa0] sm:$0xff]  ;;  %1046 = vmatpush3.bf16.msra.mxu0 %v1045_v12  ;;  %v242_v30 = vld [vmem:[#allocation5 + $0xe8] sm:$0xff]  ;;  %v575_v5 = vld [vmem:[#allocation5 + $0x38] sm:$0xff] }
  0x30   :  { %913 = vmatmul.mubr.msk.f32.vlgmr.msra.gmra.mrb[0].mxu1 %vm145_vm1, %v1353_v13  ;;  %v1048_v19 = vpack.c.bf16 %v64_v16, %v63_v15  ;;  %1047 = vmatprep.subr.bf16.mxu0 %v1274_v0  ;;  %v65_v21 = vld [vmem:[#allocation5 + $0xc0] sm:$0xff]  ;;  %v1078_v32 = vpack.c.bf16 %v242_v30, %v241_v29  ;;  %v243_v35 = vld [vmem:[#allocation5 + $0x108] sm:$0xff]  ;;  %v1123_v7 = vpack.c.bf16 %v575_v5, %v574_v4  ;;  %v411_v8 = vld [vmem:[#allocation5 + $0x90] sm:$0xff] }
  0x31   :  { %1070 = vmatpush3.bf16.msra.mxu1 %v1069_v14  ;;  %v66_v22 = vld [vmem:[#allocation5 + $0xe0] sm:$0xff]  ;;  %947 = vmatprep.mubr.msk.f32.mxu1 %vm1275_vm0, %v1276_v1  ;;  %v244_v36 = vld [vmem:[#allocation5 + $0x128] sm:$0xff]  ;;  %v412_v9 = vld [vmem:[#allocation5 + $0xb0] sm:$0xff] }
  0x32   :  { %1071 = vmatprep.subr.bf16.mxu1 %v1274_v0  ;;  %v1051_v25 = vpack.c.bf16 %v66_v22, %v65_v21  ;;  %v67_v27 = vld [vmem:[#allocation5 + $0x100] sm:$0xff]  ;;  %v1081_v38 = vpack.c.bf16 %v244_v36, %v243_v35  ;;  %v245_v41 = vld [vmem:[#allocation5 + $0x148] sm:$0xff]  ;;  %v576_v10 = vld [vmem:[#allocation5 + $0x58] sm:$0xff]  ;;  %v1102_v12 = vpack.c.bf16 %v412_v9, %v411_v8 }
  0x33   :  { %1049 = vmatpush3.bf16.msra.mxu0 %v1048_v19  ;;  %v68_v28 = vld [vmem:[#allocation5 + $0x120] sm:$0xff]  ;;  %v246_v42 = vld [vmem:[#allocation5 + $0x168] sm:$0xff]  ;;  %v577_v11 = vld [vmem:[#allocation5 + $0x78] sm:$0xff] }
  0x34   :  { %1050 = vmatprep.subr.bf16.mxu0 %v1274_v0  ;;  %v1054_v31 = vpack.c.bf16 %v68_v28, %v67_v27  ;;  %v69_v33 = vld [vmem:[#allocation5 + $0x140] sm:$0xff]  ;;  %v1084_v44 = vpack.c.bf16 %v246_v42, %v245_v41  ;;  %v247_v47 = vld [vmem:[#allocation5 + $0x188] sm:$0xff]  ;;  %v1126_v14 = vpack.c.bf16 %v577_v11, %v576_v10  ;;  %v413_v15 = vld [vmem:[#allocation5 + $0xd0] sm:$0xff] }
  0x35   :  { %1073 = vmatpush3.bf16.msra.mxu1 %v1072_v20  ;;  %v70_v34 = vld [vmem:[#allocation5 + $0x160] sm:$0xff]  ;;  %v248_v48 = vld [vmem:[#allocation5 + $0x1a8] sm:$0xff]  ;;  %v414_v16 = vld [vmem:[#allocation5 + $0xf0] sm:$0xff] }
  0x36   :  { %1074 = vmatprep.subr.bf16.mxu1 %v1274_v0  ;;  %v1057_v37 = vpack.c.bf16 %v70_v34, %v69_v33  ;;  %v71_v39 = vld [vmem:[#allocation5 + $0x180] sm:$0xff]  ;;  %v1087_v50 = vpack.c.bf16 %v248_v48, %v247_v47  ;;  %v233_v51 = vld [vmem:[#allocation2 + $0x8] sm:$0xff]  ;;  %v578_v17 = vld [vmem:[#allocation5 + $0x98] sm:$0xff]  ;;  %v1105_v19 = vpack.c.bf16 %v414_v16, %v413_v15 }
  0x37   :  { %1052 = vmatpush3.bf16.msra.mxu0 %v1051_v25  ;;  %v72_v40 = vld [vmem:[#allocation5 + $0x1a0] sm:$0xff]  ;;  %v234_v52 = vld [vmem:[#allocation2 + $0x28] sm:$0xff]  ;;  %v579_v18 = vld [vmem:[#allocation5 + $0xb8] sm:$0xff] }
  0x38   :  { %1053 = vmatprep.subr.bf16.mxu0 %v1274_v0  ;;  %v1060_v43 = vpack.c.bf16 %v72_v40, %v71_v39  ;;  %v73_v45 = vld [vmem:[#allocation5 + $0x1c0] sm:$0xff]  ;;  %v249_v53 = vld [vmem:[#allocation5 + $0x1c8] sm:$0xff]  ;;  %v1093_v56 = vpack.c.bf16 %v234_v52, %v233_v51  ;;  %v1129_v20 = vpack.c.bf16 %v579_v18, %v578_v17  ;;  %v415_v21 = vld [vmem:[#allocation5 + $0x110] sm:$0xff] }
  0x39   :  { %1076 = vmatpush3.bf16.msra.mxu1 %v1075_v26  ;;  %v74_v46 = vld [vmem:[#allocation5 + $0x1e0] sm:$0xff]  ;;  %v250_v54 = vld [vmem:[#allocation5 + $0x1e8] sm:$0xff]  ;;  %v416_v22 = vld [vmem:[#allocation5 + $0x130] sm:$0xff] }
  0x3a   :  { %1077 = vmatprep.subr.bf16.mxu1 %v1274_v0  ;;  %v1063_v49 = vpack.c.bf16 %v74_v46, %v73_v45  ;;  %v1375_v55 = vld [vmem:[%s1457_s1] sm:$0xff]  ;;  %v1090_v57 = vpack.c.bf16 %v250_v54, %v249_v53  ;;  %v580_v23 = vld [vmem:[#allocation5 + $0xd8] sm:$0xff]  ;;  %v1108_v25 = vpack.c.bf16 %v416_v22, %v415_v21  ;;  %v417_v27 = vld [vmem:[#allocation5 + $0x150] sm:$0xff] }
  0x3b   :  { %1055 = vmatpush3.bf16.msra.mxu0 %v1054_v31  ;;  %v581_v24 = vld [vmem:[#allocation5 + $0xf8] sm:$0xff]  ;;  %v418_v28 = vld [vmem:[#allocation5 + $0x170] sm:$0xff]  ;;  %v789_v9 = vld [vmem:[%s1461_s5 + $0x2] ss:$0 sm:$0xff] }
  0x3c   :  { %1056 = vmatprep.subr.bf16.mxu0 %v1274_v0  ;;  %v1132_v26 = vpack.c.bf16 %v581_v24, %v580_v23  ;;  %v582_v29 = vld [vmem:[#allocation5 + $0x118] sm:$0xff]  ;;  %v1111_v31 = vpack.c.bf16 %v418_v28, %v417_v27  ;;  %v419_v33 = vld [vmem:[#allocation5 + $0x190] sm:$0xff]  ;;  %v791_v16 = vld [vmem:[%s1461_s5 + $0x3] ss:$0 sm:$0xff] }
  0x3d   :  { %1079 = vmatpush3.bf16.msra.mxu1 %v1078_v32  ;;  %v583_v30 = vld [vmem:[#allocation5 + $0x138] sm:$0xff]  ;;  %v420_v34 = vld [vmem:[#allocation5 + $0x1b0] sm:$0xff]  ;;  %v744_v23 = vld [vmem:[%s1458_s2] sm:$0xff] }
  0x3e   :  { %1080 = vmatprep.subr.bf16.mxu1 %v1274_v0  ;;  %v1135_v32 = vpack.c.bf16 %v583_v30, %v582_v29  ;;  %v584_v35 = vld [vmem:[#allocation5 + $0x158] sm:$0xff]  ;;  %v421_v39 = vld [vmem:[#allocation5 + $0x1d0] sm:$0xff] }
  0x3f   :  { %1058 = vmatpush3.bf16.msra.mxu0 %v1057_v37  ;;  %v585_v36 = vld [vmem:[#allocation5 + $0x178] sm:$0xff]  ;;  %v1114_v37 = vpack.c.bf16 %v420_v34, %v419_v33  ;;  %v422_v40 = vld [vmem:[#allocation5 + $0x1f0] sm:$0xff] }
  0x40   :  { %1059 = vmatprep.subr.bf16.mxu0 %v1274_v0  ;;  %v586_v41 = vld [vmem:[#allocation5 + $0x198] sm:$0xff] }
  0x41   :  { %1082 = vmatpush3.bf16.msra.mxu1 %v1081_v38  ;;  %v1138_v38 = vpack.c.bf16 %v585_v36, %v584_v35  ;;  %v587_v42 = vld [vmem:[#allocation5 + $0x1b8] sm:$0xff] }
  0x42   :  { %1083 = vmatprep.subr.bf16.mxu1 %v1274_v0  ;;  %v572_v45 = vld [vmem:[#allocation2 + $0x18] sm:$0xff] }
  0x43   :  { %1061 = vmatpush3.bf16.msra.mxu0 %v1060_v43  ;;  %v1117_v43 = vpack.c.bf16 %v422_v40, %v421_v39  ;;  %v573_v46 = vld [vmem:[#allocation2 + $0x38] sm:$0xff] }
  0x44   :  { %1062 = vmatprep.subr.bf16.mxu0 %v1274_v0  ;;  %v588_v47 = vld [vmem:[#allocation5 + $0x1d8] sm:$0xff] }
  0x45   :  { %1085 = vmatpush3.bf16.msra.mxu1 %v1084_v44  ;;  %v1141_v44 = vpack.c.bf16 %v587_v42, %v586_v41  ;;  %v589_v48 = vld [vmem:[#allocation5 + $0x1f8] sm:$0xff] }
  0x46   :  { %1086 = vmatprep.subr.bf16.mxu1 %v1274_v0 }
  0x47   :  { %1064 = vmatpush3.bf16.msra.mxu0 %v1063_v49  ;;  %v1147_v49 = vpack.c.bf16 %v573_v46, %v572_v45 }
  0x48   :  { %1092 = vmatprep.subr.bf16.mxu0 %v1274_v0 }
  0x49   :  { %1088 = vmatpush3.bf16.msra.mxu1 %v1087_v50  ;;  %v1144_v50 = vpack.c.bf16 %v589_v48, %v588_v47 }
  0x4a   :  { %1089 = vmatprep.subr.bf16.mxu1 %v1274_v0  ;;  %906 = vmatmul.mubr.f32.vlgmr.msra.gmra.mrb[0].mxu0 %v1375_v55 }
  0x4b   :  { %1094 = vmatpush3.bf16.msra.mxu0 %v1093_v56  ;;  %954 = vmatprep.mubr.msk.f32.mxu0 %vm1275_vm0, %v1276_v1 }
  0x4c   :  { %1095 = vmatprep.subr.bf16.mxu0 %v1274_v0 }
  0x4d   :  { %1091 = vmatpush3.bf16.msra.mxu1 %v1090_v57 }
  0x4e   :  { %1119 = vmatprep.subr.bf16.mxu1 %v1274_v0  ;;  %955 = vmatmul.mubr.msk.f32.vlgmr.msra.gmra.mrb[2].mxu0 %vm145_vm1, %v1353_v13 }
  0x4f   :  { %1097 = vmatpush3.bf16.msra.mxu0 %v1096_v62  ;;  %989 = vmatprep.mubr.msk.f32.mxu0 %vm1275_vm0, %v1276_v1 }
  0x50   :  { %948 = vmatmul.mubr.f32.vlgmr.msra.gmra.mrb[2].mxu1 %v1375_v55  ;;  %1098 = vmatprep.subr.bf16.mxu0 %v1274_v0 }
  0x51   :  { %1121 = vmatpush3.bf16.msra.mxu1 %v1120_v63  ;;  %996 = vmatprep.mubr.msk.f32.mxu1 %vm1275_vm0, %v1276_v1 }
  0x52   :  { %1122 = vmatprep.subr.bf16.mxu1 %v1274_v0 }
  0x53   :  { %1100 = vmatpush3.bf16.msra.mxu0 %v1099_v6 }
  0x54   :  { %997 = vmatmul.mubr.msk.f32.vlgmr.msra.gmra.mrb[4].mxu1 %vm145_vm1, %v1353_v13  ;;  %1101 = vmatprep.subr.bf16.mxu0 %v1274_v0 }
  0x55   :  { %1124 = vmatpush3.bf16.msra.mxu1 %v1123_v7  ;;  %1031 = vmatprep.mubr.msk.f32.mxu1 %vm1275_vm0, %v1276_v1 }
  0x56   :  { %1125 = vmatprep.subr.bf16.mxu1 %v1274_v0 }
  0x57   :  { %1103 = vmatpush3.bf16.msra.mxu0 %v1102_v12 }
  0x58   :  { %1104 = vmatprep.subr.bf16.mxu0 %v1274_v0 }
  0x59   :  { %1127 = vmatpush3.bf16.msra.mxu1 %v1126_v14 }
  0x5a   :  { %1128 = vmatprep.subr.bf16.mxu1 %v1274_v0 }
  0x5b   :  { %1106 = vmatpush3.bf16.msra.mxu0 %v1105_v19 }
  0x5c   :  { %1107 = vmatprep.subr.bf16.mxu0 %v1274_v0 }
  0x5d   :  { %1130 = vmatpush3.bf16.msra.mxu1 %v1129_v20 }
  0x5e   :  { %1131 = vmatprep.subr.bf16.mxu1 %v1274_v0 }
  0x5f   :  { %1109 = vmatpush3.bf16.msra.mxu0 %v1108_v25 }
  0x60   :  { %1110 = vmatprep.subr.bf16.mxu0 %v1274_v0 }
  0x61   :  { %1133 = vmatpush3.bf16.msra.mxu1 %v1132_v26 }
  0x62   :  { %1134 = vmatprep.subr.bf16.mxu1 %v1274_v0 }
  0x63   :  { %1112 = vmatpush3.bf16.msra.mxu0 %v1111_v31 }
  0x64   :  { %1113 = vmatprep.subr.bf16.mxu0 %v1274_v0 }
  0x65   :  { %1136 = vmatpush3.bf16.msra.mxu1 %v1135_v32 }
  0x66   :  { %1137 = vmatprep.subr.bf16.mxu1 %v1274_v0 }
  0x67   :  { %1115 = vmatpush3.bf16.msra.mxu0 %v1114_v37 }
  0x68   :  { %1116 = vmatprep.subr.bf16.mxu0 %v1274_v0 }
  0x69   :  { %1139 = vmatpush3.bf16.msra.mxu1 %v1138_v38 }
  0x6a   :  { %1140 = vmatprep.subr.bf16.mxu1 %v1274_v0 }
  0x6b   :  { %1118 = vmatpush3.bf16.msra.mxu0 %v1117_v43 }
  0x6c   :  { %1146 = vmatprep.subr.bf16.mxu0 %v1274_v0 }
  0x6d   :  { %1142 = vmatpush3.bf16.msra.mxu1 %v1141_v44 }
  0x6e   :  { %1143 = vmatprep.subr.bf16.mxu1 %v1274_v0  ;;  %990 = vmatmul.mubr.f32.vlgmr.msra.gmra.mrb[4].mxu0 %v1375_v55 }
  0x6f   :  { %1148 = vmatpush3.bf16.msra.mxu0 %v1147_v49  ;;  %1038 = vmatprep.mubr.msk.f32.mxu0 %vm1275_vm0, %v1276_v1  ;;  %v786_v1 = vld [vmem:[%s1461_s5 + $0x1] ss:$0 sm:$0xff] }
  0x71   :  { %1145 = vmatpush3.bf16.msra.mxu1 %v1144_v50 }
  0x72   :  { %1039 = vmatmul.mubr.msk.f32.vlgmr.msra.gmra.mrb[6].mxu0 %vm145_vm1, %v1353_v13  ;;  %v783_v13 = vld [vmem:[%s1461_s5] ss:$0 sm:$0xff]  ;;  %s1218_s5 = scalar_lea.vmem %s769_s15, 128 }
  0x73   :  { %p1219_p2 = scmp.ne.s32.totalorder %s769_s15, %s1218_s5  ;;  %p1224_p4 = scmp.lt.s32.totalorder %s1218_s5, %s1218_s5 }
  0x74   :  { %1032 = vmatmul.mubr.f32.vlgmr.msra.gmra.mrb[6].mxu1 %v1375_v55 }
  0x75   :  { %p1225_p5 = por %p1224_p4, %p1223_p3 }
  0x77   :  { %p1226_p6 = pnand %p1225_p5, %p1219_p2 }
 0x103   :  { %v215_v51 = vpop.f32.mrb[0].mxu1 }
 0x104   :  { %v914_v52 = vpop.f32.mrb[1].mxu1 }
 0x11d   :  { %v141_v53 = vpop.f32.mrb[0].mxu0 }
 0x11e   :  { %v216_v54 = vadd.f32 %v215_v51, %v141_v53  ;;  %v907_v56 = vpop.f32.mrb[1].mxu0 }
 0x120   :  { %v226_v63 = vadd.f32 %v783_v13, %v216_v54 }
 0x121   :  { %v387_v57 = vpop.f32.mrb[2].mxu0 }
 0x122   :  { %v956_v0 = vpop.f32.mrb[3].mxu0  ;;  %v784_v3 = vmul.f32 -1.442695, %v226_v63 }
 0x123   :  { %v317_v58 = vpop.f32.mrb[2].mxu1 }
 0x124   :  { %v388_v59 = vadd.f32 %v387_v57, %v317_v58  ;;  %v949_v60 = vpop.f32.mrb[3].mxu1 }
 0x126   :  { %v398_v55 = vadd.f32 %v786_v1, %v388_v59 }
 0x127   :  { %v559_v61 = vpop.f32.mrb[4].mxu1 }
 0x128   :  { %v998_v62 = vpop.f32.mrb[5].mxu1  ;;  %v787_v2 = vmul.f32 -1.442695, %v398_v55 }
 0x12a   :  { %1158 = vpow2.f32 %v787_v2 }
 0x12b   :  { %1160 = vpow2.f32 %v784_v3 }
 0x134   :  { %v1159_v4 = vpop.eup %1158 }
 0x135   :  { %v1161_v5 = vpop.eup %1160  ;;  %v402_v6 = vadd.f32 1.0, %v1159_v4 }
 0x136   :  { %v230_v7 = vadd.f32 1.0, %v1161_v5 }
 0x137   :  { %1162 = vrcp.f32 %v402_v6 }
 0x138   :  { %1164 = vrcp.f32 %v230_v7 }
 0x141   :  { %v489_v8 = vpop.f32.mrb[4].mxu0  ;;  %v1163_v22 = vpop.eup %1162 }
 0x142   :  { %v560_v10 = vadd.f32 %v559_v61, %v489_v8  ;;  %v991_v11 = vpop.f32.mrb[5].mxu0  ;;  %v1165_v24 = vpop.eup %1164  ;;  %v745_v26 = vmul.f32 %v1163_v22, %v744_v23 }
 0x144   :  { %v570_v12 = vadd.f32 %v789_v9, %v560_v10 }
 0x145   :  { %v726_v14 = vpop.f32.mrb[6].mxu0 }
 0x146   :  { %1166 = vtanh.f32 %v570_v12  ;;  %v1040_v17 = vpop.f32.mrb[7].mxu0 }
 0x147   :  { %v656_v15 = vpop.f32.mrb[6].mxu1 }
 0x148   :  { %v727_v18 = vadd.f32 %v726_v14, %v656_v15  ;;  %v1033_v19 = vpop.f32.mrb[7].mxu1 }
 0x14a   :  { %v737_v20 = vadd.f32 %v791_v16, %v727_v18 }
 0x14c   :  { %v792_v21 = vmul.f32 -1.442695, %v737_v20 }
 0x14e   :  { %1168 = vpow2.f32 %v792_v21 }
 0x150   :  { %v1167_v25 = vpop.eup %1166 }
 0x151   :  { %v746_v27 = vmul.f32 %v1167_v25, %v1165_v24 }
 0x153   :  { %v747_v28 = vadd.f32 %v746_v27, %v745_v26 }
 0x155   :  { %750 = vst [vmem:[#allocation8] sm:$0xff] %v747_v28 }
 0x156   :  { %1229 = shalt.err (!%p1226_p6)
}
 0x157   :  { %s1230_s2 = scalar_lea.hbm %s1463_s7, 128 }
 0x158   :  { %p1231_p7 = scmp.ne.s32.totalorder %s1463_s7, %s1230_s2  ;;  %p1234_p8 = scmp.lt.u32.totalorder %s1230_s2, %s1463_s7 }
 0x15a   :  { %p1236_p9 = pnand %p1234_p8, %p1231_p7 }
 0x15c   :  { %1239 = shalt.err (!%p1236_p9)
}
 0x15d   :  { %771 = dma.vmem_to_hbm [thread:$0]  %s769_s15, 128, %s1463_s7, [#allocation9]   ;;  %v1169_v29 = vpop.eup %1168  ;;  %1170 = vtanh.f32 %v747_v28 }
 0x15e   :  { %v741_v30 = vadd.f32 1.0, %v1169_v29  ;;  %s1278_s24 = smov [#allocation7]  }
 0x15f   :  { %s758_s3 = sshll.u32 %s1278_s24, 4  ;;  %s759_s3 = int_to_ptr.vmem [resolvable:$true] %s758_s3 }
 0x160   :  { %1172 = vrcp.f32 %v741_v30  ;;  %s1240_s25 = scalar_lea.vmem %s759_s3, 128  ;;  %p1245_p11 = scmp.lt.s32.totalorder %s759_s3, %s759_s3 }
 0x161   :  { %p1241_p10 = scmp.ne.s32.totalorder %s759_s3, %s1240_s25  ;;  %p1246_p12 = scmp.lt.s32.totalorder %s1240_s25, %s1240_s25 }
 0x163   :  { %p1247_p13 = por %p1246_p12, %p1245_p11 }
 0x165   :  { %p1248_p0 = pnand %p1247_p13, %p1241_p10 }
 0x167   :  { %v1171_v31 = vpop.eup %1170 }
 0x16a   :  { %v1173_v32 = vpop.eup %1172 }
 0x16b   :  { %v749_v33 = vmul.f32 %v1173_v32, %v1171_v31 }
 0x16d   :  { %751 = vst [vmem:[#allocation7] sm:$0xff] %v749_v33 }
 0x16e   :  { %1251 = shalt.err (!%p1248_p0)
}
 0x16f   :  { %s1252_s26 = scalar_lea.hbm %s1462_s6, 128 }
 0x170   :  { %p1253_p1 = scmp.ne.s32.totalorder %s1462_s6, %s1252_s26  ;;  %p1256_p2 = scmp.lt.u32.totalorder %s1252_s26, %s1462_s6 }
 0x172   :  { %p1258_p3 = pnand %p1256_p2, %p1253_p1 }
 0x174   :  { %1261 = shalt.err (!%p1258_p3)
}
 0x175   :  { %761 = dma.vmem_to_hbm [thread:$0]  %s759_s3, 128, %s1462_s6, [#allocation4]  }
 0x176   :  { %1266 = dma.done.wait [#allocation4], 128  }
 0x177   :  { %1267 = vsyncadd [#allocation4], 4294967168 }
 0x178   :  { %1268 = dma.done.wait [#allocation9], 128  }
 0x179   :  { %1269 = vsyncadd [#allocation9], 4294967168 }
 0x17a   :  { %778 = vsyncpa [#allocation3], 1 }
 0x17b   :  { %779 = vsyncpa [#allocation6], 1 }
 0x17c   :  { %780 = vsyncpa [#allocation4], 1 }
 0x17d   :  { %781 = vsyncpa [#allocation9], 1 }

</bundles_post_ra>
